<compile_context>
chip_gen: v6e
topology: v6e:2x2x1
jax: 0.10.0
libtpu: 0.0.40
codegen_flags: <defaults>
</compile_context>

<pallas_src>
import functools

import jax
import jax.numpy as jnp
from jax.experimental import pallas as pl
from jax.experimental.pallas import tpu as pltpu

LANE = 128  # vreg lane width


def pinn_kernel(x_ref, w1_ref, b1_ref, w2_ref, b2_ref,
                w3_ref, b3_ref, w4_ref, b4_ref, o_ref):
    cdt = w1_ref.dtype  # compute dtype for MXU operands (f32 or bf16)

    h = jnp.dot(x_ref[...].astype(cdt), w1_ref[...],
                preferred_element_type=jnp.float32) + b1_ref[...]
    h = jnp.maximum(h, 0.0)

    h = jnp.dot(h.astype(cdt), w2_ref[...],
                preferred_element_type=jnp.float32) + b2_ref[...]
    h = jnp.maximum(h, 0.0)

    h = jnp.dot(h.astype(cdt), w3_ref[...],
                preferred_element_type=jnp.float32) + b3_ref[...]
    h = jnp.maximum(h, 0.0)

    y = jnp.dot(h.astype(cdt), w4_ref[...],
                preferred_element_type=jnp.float32) + b4_ref[...]
    o_ref[...] = y.astype(o_ref.dtype)


def _pad2d(a, rows, cols):
    pr, pc = rows - a.shape[0], cols - a.shape[1]
    if pr == 0 and pc == 0:
        return a
    return jnp.pad(a, ((0, pr), (0, pc)))


def _pad_params(params, compute_dtype):
    """Zero-pad hidden/output widths to 128 lanes. Exact (ReLU(0)=0)."""
    d_in = params["w1"].shape[0]
    w1 = _pad2d(params["w1"], d_in, LANE)        # (d_in, 128)
    w2 = _pad2d(params["w2"], LANE, LANE)        # (128, 128)  (cols 64 -> 128)
    w3 = _pad2d(params["w3"], LANE, LANE)        # (128, 128)  (64x32 -> 128x128)
    w4 = _pad2d(params["w4"], LANE, LANE)        # (128, 128)  (32xd_out -> 128x128)
    b1 = _pad2d(params["b1"], 1, LANE)
    b2 = _pad2d(params["b2"], 1, LANE)
    b3 = _pad2d(params["b3"], 1, LANE)
    b4 = _pad2d(params["b4"], 1, LANE)
    return dict(
        w1=w1.astype(compute_dtype), b1=b1.astype(jnp.float32),
        w2=w2.astype(compute_dtype), b2=b2.astype(jnp.float32),
        w3=w3.astype(compute_dtype), b3=b3.astype(jnp.float32),
        w4=w4.astype(compute_dtype), b4=b4.astype(jnp.float32),
    )


def _choose_tile_m(n, max_tile=1024):
    # Largest multiple of 8 (<= max_tile) keeping at least 2 grid steps
    # (so both v7x TensorCores get work); fall back to 8 for tiny batches.
    t = (n // 2) // 8 * 8
    return max(8, min(max_tile, t))


@functools.partial(jax.jit, static_argnames=("tile_m", "compute_dtype"))
def pinn_forward(x, params, *, tile_m=None, compute_dtype=jnp.float32):
    """x: (N, input_dim). params: dict of (in,out) weights and (1,out) biases."""
    x = x.astype(jnp.float32)
    N, d_in = x.shape
    d_out = params["w4"].shape[1]

    if tile_m is None:
        tile_m = _choose_tile_m(N)

    # Pad batch to a multiple of tile_m (ragged tail handled by zero rows).
    n_grid = pl.cdiv(N, tile_m)
    n_pad = n_grid * tile_m
    if n_pad != N:
        x = jnp.pad(x, ((0, n_pad - N), (0, 0)))

    p = _pad_params(params, compute_dtype)

    def resident(shape):
        # whole-array block, same block every grid step -> stays VMEM-resident
        return pl.BlockSpec(shape, lambda i: (0, 0))

    in_specs = [
        pl.BlockSpec((tile_m, d_in), lambda i: (i, 0)),
        resident(p["w1"].shape), resident(p["b1"].shape),
        resident(p["w2"].shape), resident(p["b2"].shape),
        resident(p["w3"].shape), resident(p["b3"].shape),
        resident(p["w4"].shape), resident(p["b4"].shape),
    ]
    # Lane-dense (tile_m, 128) output block -> unmasked vector stores.
    out_spec = pl.BlockSpec((tile_m, LANE), lambda i: (i, 0))

    out = pl.pallas_call(
        pinn_kernel,
        out_shape=jax.ShapeDtypeStruct((n_pad, LANE), jnp.float32),
        grid=(n_grid,),
        in_specs=in_specs,
        out_specs=out_spec,
        compiler_params=pltpu.CompilerParams(
            dimension_semantics=("parallel",)),
    )(x, p["w1"], p["b1"], p["w2"], p["b2"], p["w3"], p["b3"], p["w4"], p["b4"])

    return out[:N, :d_out]


def init_params(key, input_dim, output_dim):
    """Deterministic nn.Linear-style init; weights stored (in, out)."""
    dims = [(input_dim, 128), (128, 64), (64, 32), (32, output_dim)]
    params = {}
    for idx, (fi, fo) in enumerate(dims, start=1):
        key, kw, kb = jax.random.split(key, 3)
        bound = 1.0 / jnp.sqrt(fi)
        params[f"w{idx}"] = jax.random.uniform(
            kw, (fi, fo), jnp.float32, minval=-bound, maxval=bound)
        params[f"b{idx}"] = jax.random.uniform(
            kb, (1, fo), jnp.float32, minval=-bound, maxval=bound)
    return params


def pinn_forward_ref(x, params):
    h = jnp.maximum(x @ params["w1"] + params["b1"], 0.0)
    h = jnp.maximum(h @ params["w2"] + params["b2"], 0.0)
    h = jnp.maximum(h @ params["w3"] + params["b3"], 0.0)
    return h @ params["w4"] + params["b4"]


if __name__ == "__main__":
    key = jax.random.PRNGKey(0)
    k_param, k_x = jax.random.split(key)

    # input_dim = 2 + num_encodings (as implied by constraint_loss); output_dim = 3.
    input_dim, output_dim = 10, 3
    batch = 64  # small demo batch; tile_m auto-selects 32 -> grid of 2

    params = init_params(k_param, input_dim, output_dim)
    x = jax.random.normal(k_x, (batch, input_dim), jnp.float32)

    y = pinn_forward(x, params)  # compute_dtype=jnp.bfloat16 for v6e/v7x MXU speed
    y = jax.block_until_ready(y)

    y_ref = pinn_forward_ref(x, params)
    assert y.shape == (batch, output_dim)
    assert jnp.allclose(y, y_ref, atol=1e-5, rtol=1e-5), "mismatch vs reference"

    print("KERNEL_OK")
</pallas_src>

<mosaic_0001>
module attributes {stable_mosaic.version = 11 : i64} {
  func.func @pinn_kernel(%arg0: i32, %arg1: memref<32x10xf32, #tpu.memory_space<vmem>>, %arg2: memref<10x128xf32, #tpu.memory_space<vmem>>, %arg3: memref<1x128xf32, #tpu.memory_space<vmem>>, %arg4: memref<128x128xf32, #tpu.memory_space<vmem>>, %arg5: memref<1x128xf32, #tpu.memory_space<vmem>>, %arg6: memref<128x128xf32, #tpu.memory_space<vmem>>, %arg7: memref<1x128xf32, #tpu.memory_space<vmem>>, %arg8: memref<128x128xf32, #tpu.memory_space<vmem>>, %arg9: memref<1x128xf32, #tpu.memory_space<vmem>>, %arg10: memref<32x128xf32, #tpu.memory_space<vmem>>) attributes {dimension_semantics = [#tpu.dimension_semantics<parallel>], iteration_bounds = array<i64: 2>, scalar_prefetch = 0 : i64, scratch_operands = 0 : i64, tpu.core_type = #tpu.core_type<tc>, window_params = [{transform_indices = @transform_0, window_bounds = array<i64: 32, 10>}, {pipeline_mode = #tpu.pipeline_mode<synchronous>, transform_indices = @transform_1, window_bounds = array<i64: 10, 128>}, {pipeline_mode = #tpu.pipeline_mode<synchronous>, transform_indices = @transform_2, window_bounds = array<i64: 1, 128>}, {pipeline_mode = #tpu.pipeline_mode<synchronous>, transform_indices = @transform_3, window_bounds = array<i64: 128, 128>}, {pipeline_mode = #tpu.pipeline_mode<synchronous>, transform_indices = @transform_4, window_bounds = array<i64: 1, 128>}, {pipeline_mode = #tpu.pipeline_mode<synchronous>, transform_indices = @transform_5, window_bounds = array<i64: 128, 128>}, {pipeline_mode = #tpu.pipeline_mode<synchronous>, transform_indices = @transform_6, window_bounds = array<i64: 1, 128>}, {pipeline_mode = #tpu.pipeline_mode<synchronous>, transform_indices = @transform_7, window_bounds = array<i64: 128, 128>}, {pipeline_mode = #tpu.pipeline_mode<synchronous>, transform_indices = @transform_8, window_bounds = array<i64: 1, 128>}, {transform_indices = @transform_9, window_bounds = array<i64: 32, 128>}]} {
    %c0 = arith.constant 0 : index
    %c0_0 = arith.constant 0 : index
    %0 = vector.load %arg1[%c0, %c0_0] : memref<32x10xf32, #tpu.memory_space<vmem>>, vector<32x10xf32>
    %c0_1 = arith.constant 0 : index
    %c0_2 = arith.constant 0 : index
    %1 = vector.load %arg2[%c0_1, %c0_2] : memref<10x128xf32, #tpu.memory_space<vmem>>, vector<10x128xf32>
    %cst = arith.constant dense<0.000000e+00> : vector<32x128xf32>
    %2 = tpu.matmul %0, %1, %cst {dimension_numbers = #tpu.dot_dimension_numbers<[1], [0], [0], [1], [0, 0, 1, 1], [], []>} : vector<32x10xf32>, vector<10x128xf32>, vector<32x128xf32> -> vector<32x128xf32>
    %c0_3 = arith.constant 0 : index
    %c0_4 = arith.constant 0 : index
    %3 = vector.load %arg3[%c0_3, %c0_4] : memref<1x128xf32, #tpu.memory_space<vmem>>, vector<1x128xf32>
    %4 = vector.broadcast %3 : vector<1x128xf32> to vector<32x128xf32>
    %5 = arith.addf %2, %4 : vector<32x128xf32>
    %cst_5 = arith.constant 0.000000e+00 : f32
    %6 = vector.broadcast %cst_5 : f32 to vector<32x128xf32>
    %7 = arith.maximumf %5, %6 : vector<32x128xf32>
    %c0_6 = arith.constant 0 : index
    %c0_7 = arith.constant 0 : index
    %8 = vector.load %arg4[%c0_6, %c0_7] : memref<128x128xf32, #tpu.memory_space<vmem>>, vector<128x128xf32>
    %cst_8 = arith.constant dense<0.000000e+00> : vector<32x128xf32>
    %9 = tpu.matmul %7, %8, %cst_8 {dimension_numbers = #tpu.dot_dimension_numbers<[1], [0], [0], [1], [0, 0, 1, 1], [], []>} : vector<32x128xf32>, vector<128x128xf32>, vector<32x128xf32> -> vector<32x128xf32>
    %c0_9 = arith.constant 0 : index
    %c0_10 = arith.constant 0 : index
    %10 = vector.load %arg5[%c0_9, %c0_10] : memref<1x128xf32, #tpu.memory_space<vmem>>, vector<1x128xf32>
    %11 = vector.broadcast %10 : vector<1x128xf32> to vector<32x128xf32>
    %12 = arith.addf %9, %11 : vector<32x128xf32>
    %cst_11 = arith.constant 0.000000e+00 : f32
    %13 = vector.broadcast %cst_11 : f32 to vector<32x128xf32>
    %14 = arith.maximumf %12, %13 : vector<32x128xf32>
    %c0_12 = arith.constant 0 : index
    %c0_13 = arith.constant 0 : index
    %15 = vector.load %arg6[%c0_12, %c0_13] : memref<128x128xf32, #tpu.memory_space<vmem>>, vector<128x128xf32>
    %cst_14 = arith.constant dense<0.000000e+00> : vector<32x128xf32>
    %16 = tpu.matmul %14, %15, %cst_14 {dimension_numbers = #tpu.dot_dimension_numbers<[1], [0], [0], [1], [0, 0, 1, 1], [], []>} : vector<32x128xf32>, vector<128x128xf32>, vector<32x128xf32> -> vector<32x128xf32>
    %c0_15 = arith.constant 0 : index
    %c0_16 = arith.constant 0 : index
    %17 = vector.load %arg7[%c0_15, %c0_16] : memref<1x128xf32, #tpu.memory_space<vmem>>, vector<1x128xf32>
    %18 = vector.broadcast %17 : vector<1x128xf32> to vector<32x128xf32>
    %19 = arith.addf %16, %18 : vector<32x128xf32>
    %cst_17 = arith.constant 0.000000e+00 : f32
    %20 = vector.broadcast %cst_17 : f32 to vector<32x128xf32>
    %21 = arith.maximumf %19, %20 : vector<32x128xf32>
    %c0_18 = arith.constant 0 : index
    %c0_19 = arith.constant 0 : index
    %22 = vector.load %arg8[%c0_18, %c0_19] : memref<128x128xf32, #tpu.memory_space<vmem>>, vector<128x128xf32>
    %cst_20 = arith.constant dense<0.000000e+00> : vector<32x128xf32>
    %23 = tpu.matmul %21, %22, %cst_20 {dimension_numbers = #tpu.dot_dimension_numbers<[1], [0], [0], [1], [0, 0, 1, 1], [], []>} : vector<32x128xf32>, vector<128x128xf32>, vector<32x128xf32> -> vector<32x128xf32>
    %c0_21 = arith.constant 0 : index
    %c0_22 = arith.constant 0 : index
    %24 = vector.load %arg9[%c0_21, %c0_22] : memref<1x128xf32, #tpu.memory_space<vmem>>, vector<1x128xf32>
    %25 = vector.broadcast %24 : vector<1x128xf32> to vector<32x128xf32>
    %26 = arith.addf %23, %25 : vector<32x128xf32>
    %c0_23 = arith.constant 0 : index
    %c0_24 = arith.constant 0 : index
    %27 = vector.load %arg10[%c0_23, %c0_24] : memref<32x128xf32, #tpu.memory_space<vmem>>, vector<32x128xf32>
    tpu.vector_store %arg10[%c0_23, %c0_24], %26 {strides = array<i32>} : memref<32x128xf32, #tpu.memory_space<vmem>>, vector<32x128xf32>,
    return
  }
  func.func @transform_0(%arg0: i32) -> (i32, i32) {
    %c0_i32 = arith.constant 0 : i32
    %c0_i32_0 = arith.constant 0 : i32
    return %arg0, %c0_i32 : i32, i32
  }
  func.func @transform_1(%arg0: i32) -> (i32, i32) {
    %c0_i32 = arith.constant 0 : i32
    %c0_i32_0 = arith.constant 0 : i32
    %c0_i32_1 = arith.constant 0 : i32
    return %c0_i32, %c0_i32_0 : i32, i32
  }
  func.func @transform_2(%arg0: i32) -> (i32, i32) {
    %c0_i32 = arith.constant 0 : i32
    %c0_i32_0 = arith.constant 0 : i32
    %c0_i32_1 = arith.constant 0 : i32
    return %c0_i32, %c0_i32_0 : i32, i32
  }
  func.func @transform_3(%arg0: i32) -> (i32, i32) {
    %c0_i32 = arith.constant 0 : i32
    %c0_i32_0 = arith.constant 0 : i32
    %c0_i32_1 = arith.constant 0 : i32
    return %c0_i32, %c0_i32_0 : i32, i32
  }
  func.func @transform_4(%arg0: i32) -> (i32, i32) {
    %c0_i32 = arith.constant 0 : i32
    %c0_i32_0 = arith.constant 0 : i32
    %c0_i32_1 = arith.constant 0 : i32
    return %c0_i32, %c0_i32_0 : i32, i32
  }
  func.func @transform_5(%arg0: i32) -> (i32, i32) {
    %c0_i32 = arith.constant 0 : i32
    %c0_i32_0 = arith.constant 0 : i32
    %c0_i32_1 = arith.constant 0 : i32
    return %c0_i32, %c0_i32_0 : i32, i32
  }
  func.func @transform_6(%arg0: i32) -> (i32, i32) {
    %c0_i32 = arith.constant 0 : i32
    %c0_i32_0 = arith.constant 0 : i32
    %c0_i32_1 = arith.constant 0 : i32
    return %c0_i32, %c0_i32_0 : i32, i32
  }
  func.func @transform_7(%arg0: i32) -> (i32, i32) {
    %c0_i32 = arith.constant 0 : i32
    %c0_i32_0 = arith.constant 0 : i32
    %c0_i32_1 = arith.constant 0 : i32
    return %c0_i32, %c0_i32_0 : i32, i32
  }
  func.func @transform_8(%arg0: i32) -> (i32, i32) {
    %c0_i32 = arith.constant 0 : i32
    %c0_i32_0 = arith.constant 0 : i32
    %c0_i32_1 = arith.constant 0 : i32
    return %c0_i32, %c0_i32_0 : i32, i32
  }
  func.func @transform_9(%arg0: i32) -> (i32, i32) {
    %c0_i32 = arith.constant 0 : i32
    %c0_i32_0 = arith.constant 0 : i32
    return %arg0, %c0_i32 : i32, i32
  }
}

</mosaic_0001>

<bundles_post_ra>
// kernel: pinn_forward.1
= control target key start
LH: loop header
LB: loop body
LE: loop exit
PB: predicated region body
PF: predicated region fallthrough
CT: control target
= control target key end

     0   :  { %s1123_s30 = smov 0   ;;  %s1313_s0 = inlined_call_operand.vmem [shape: f32[64,10], index: 0, kind: input, shape index: {}]   ;;  %s1314_s1 = inlined_call_operand.vmem [shape: f32[10,128], index: 1, kind: input, shape index: {}]   ;;  %s1315_s2 = inlined_call_operand.vmem [shape: f32[1,128], index: 2, kind: input, shape index: {}]   ;;  %s1316_s3 = inlined_call_operand.vmem [shape: f32[128,128], index: 3, kind: input, shape index: {}]   ;;  %s1317_s4 = inlined_call_operand.vmem [shape: f32[1,128], index: 4, kind: input, shape index: {}]   ;;  %s1318_s5 = inlined_call_operand.vmem [shape: f32[128,128], index: 5, kind: input, shape index: {}]   ;;  %s1319_s6 = inlined_call_operand.vmem [shape: f32[1,128], index: 6, kind: input, shape index: {}]   ;;  %s1320_s7 = inlined_call_operand.vmem [shape: f32[128,128], index: 7, kind: input, shape index: {}]   ;;  %s1321_s8 = inlined_call_operand.vmem [shape: f32[1,128], index: 8, kind: input, shape index: {}]   ;;  %s1322_s9 = inlined_call_operand.vmem [shape: f32[64,128], index: 9, kind: output, shape index: {}]  }
   0x1 LB: > { %s847_s10 = sadd.s32 4294967295, %s1071_s30   ;;  %p851_p0 = scmp.ge.s32.totalorder %s1071_s30, 1  ;;  %s1071_s30 = sphi %s1123_s30, %s19_s30  }
   0x2   : > { %p288_p1 = scmp.lt.s32.totalorder %s1071_s30, 3 }
   0x4   : > { %p289_p2 = pnand %p851_p0, %p288_p1 }
   0x5   : > { %s852_s15 = sshll.u32 (!%p289_p2), %s847_s10, 2 }
   0x6   : > { %292 = sbr.rel (%p289_p2) target bundleno = 819 (0x333), region = 56  ;;  %p325_p3 = scmp.lt.s32.totalorder (!%p289_p2), %s852_s15, 7 }
   0xb   : > { %v341_v0 = vld [vmem:[%s1314_s1 + $0x8] sm:$0x3]  ;;  %vm362_vm0 = vcmask 1041408   ;;  %v340_v1 = vld [vmem:[%s1314_s1] sm:$0xff]  ;;  %v470_v2 = vld [vmem:[%s1316_s3 + $0x78] sm:$0xff]  ;;  %s1324_s15 = smov (!%p325_p3, %s852_s15), 7 }
   0xc   : > { %933 = vmatprep.subr.msk.mxu0 %vm362_vm0, %v341_v0  ;;  %v469_v3 = vld [vmem:[%s1316_s3 + $0x70] sm:$0xff]  ;;  %943 = vmatprep.subr.mxu1 %v470_v2  ;;  %v468_v4 = vld [vmem:[%s1316_s3 + $0x68] sm:$0xff]  ;;  %s853_s22 = sshll.u32 %s1324_s15, 3  ;;  %vm349_vm1 = vcmask 80896   ;;  %v467_v5 = vld [vmem:[%s1316_s3 + $0x60] sm:$0xff] }
   0xd   : > { %934 = vmatpush3.msk.msra.mxu0 %vm362_vm0, %v341_v0  ;;  %944 = vmatpush3.msra.mxu1 %v470_v2  ;;  %s328_s27 = scalar_lea.vmem %s1313_s0, %s853_s22  ;;  %v466_v6 = vld [vmem:[%s1316_s3 + $0x58] sm:$0xff]  ;;  %v465_v10 = vld [vmem:[%s1316_s3 + $0x50] sm:$0xff]  ;;  %v464_v12 = vld [vmem:[%s1316_s3 + $0x48] sm:$0xff]  ;;  %s334_s17 = scalar_lea.vmem %s1322_s9, %s853_s22 }
   0xe   : > { %935 = vmatprep.subr.mxu0 %v340_v1  ;;  %945 = vmatprep.subr.mxu1 %v469_v3  ;;  %v336_v7 = vld [vmem:[%s328_s27] sm:$0xff]  ;;  %v337_v8 = vld [vmem:[%s328_s27 + $0x8] sm:$0xff]  ;;  %v338_v9 = vld [vmem:[%s328_s27 + $0x10] sm:$0xff] }
   0xf   : > { %936 = vmatpush3.msra.mxu0 %v340_v1  ;;  %946 = vmatpush3.msra.mxu1 %v469_v3  ;;  %v339_v11 = vld [vmem:[%s328_s27 + $0x18] sm:$0xff]  ;;  %v463_v13 = vld [vmem:[%s1316_s3 + $0x40] sm:$0xff]  ;;  %v461_v15 = vld [vmem:[%s1316_s3 + $0x30] sm:$0xff] }
  0x10   : > { %947 = vmatprep.subr.mxu1 %v468_v4  ;;  %937 = vmatprep.mubr.msk.f32.mxu0 %vm349_vm1, %v336_v7  ;;  %v462_v14 = vld [vmem:[%s1316_s3 + $0x38] sm:$0xff]  ;;  %v460_v16 = vld [vmem:[%s1316_s3 + $0x28] sm:$0xff]  ;;  %v459_v17 = vld [vmem:[%s1316_s3 + $0x20] sm:$0xff] }
  0x11   : > { %948 = vmatpush3.msra.mxu1 %v468_v4  ;;  %938 = vmatmul.mubr.msk.f32.vlgmr.msra.gmra.mxu0 %vm349_vm1, %v337_v8  ;;  %v458_v18 = vld [vmem:[%s1316_s3 + $0x18] sm:$0xff]  ;;  %v457_v19 = vld [vmem:[%s1316_s3 + $0x10] sm:$0xff]  ;;  %v456_v20 = vld [vmem:[%s1316_s3 + $0x8] sm:$0xff] }
  0x12   : > { %949 = vmatprep.subr.mxu1 %v467_v5  ;;  %940 = vmatprep.mubr.msk.f32.mxu0 %vm349_vm1, %v338_v9  ;;  %v455_v21 = vld [vmem:[%s1316_s3] sm:$0xff]  ;;  %v582_v22 = vld [vmem:[%s1318_s5 + $0x78] sm:$0xff]  ;;  %v581_v23 = vld [vmem:[%s1318_s5 + $0x70] sm:$0xff] }
  0x13   : > { %950 = vmatpush3.msra.mxu1 %v467_v5  ;;  %981 = vmatprep.subr.mxu0 %v582_v22  ;;  %v580_v24 = vld [vmem:[%s1318_s5 + $0x68] sm:$0xff]  ;;  %v579_v25 = vld [vmem:[%s1318_s5 + $0x60] sm:$0xff]  ;;  %v578_v26 = vld [vmem:[%s1318_s5 + $0x58] sm:$0xff] }
  0x14   : > { %951 = vmatprep.subr.mxu1 %v466_v6  ;;  %982 = vmatpush3.msra.mxu0 %v582_v22  ;;  %v577_v27 = vld [vmem:[%s1318_s5 + $0x50] sm:$0xff]  ;;  %v576_v28 = vld [vmem:[%s1318_s5 + $0x48] sm:$0xff]  ;;  %v575_v29 = vld [vmem:[%s1318_s5 + $0x40] sm:$0xff] }
  0x15   : > { %952 = vmatpush3.msra.mxu1 %v466_v6  ;;  %941 = vmatmul.mubr.msk.f32.gmra.mxu0 %vm349_vm1, %v339_v11  ;;  %v574_v30 = vld [vmem:[%s1318_s5 + $0x38] sm:$0xff]  ;;  %v573_v31 = vld [vmem:[%s1318_s5 + $0x30] sm:$0xff]  ;;  %v572_v32 = vld [vmem:[%s1318_s5 + $0x28] sm:$0xff] }
  0x16   : > { %953 = vmatprep.subr.mxu1 %v465_v10  ;;  %983 = vmatprep.subr.mxu0 %v581_v23  ;;  %v571_v33 = vld [vmem:[%s1318_s5 + $0x20] sm:$0xff]  ;;  %v570_v47 = vld [vmem:[%s1318_s5 + $0x18] sm:$0xff]  ;;  %v569_v48 = vld [vmem:[%s1318_s5 + $0x10] sm:$0xff] }
  0x17   : > { %954 = vmatpush3.msra.mxu1 %v465_v10  ;;  %984 = vmatpush3.msra.mxu0 %v581_v23  ;;  %v856_v34 = vld [vmem:[%s1315_s2] ss:$0 sm:$0xff]  ;;  %v568_v49 = vld [vmem:[%s1318_s5 + $0x8] sm:$0xff]  ;;  %v694_v51 = vld [vmem:[%s1320_s7 + $0x78] sm:$0xff] }
  0x18   : > { %955 = vmatprep.subr.mxu1 %v464_v12  ;;  %985 = vmatprep.subr.mxu0 %v580_v24  ;;  %v567_v50 = vld [vmem:[%s1318_s5] sm:$0xff]  ;;  %v693_v52 = vld [vmem:[%s1320_s7 + $0x70] sm:$0xff]  ;;  %v692_v53 = vld [vmem:[%s1320_s7 + $0x68] sm:$0xff] }
  0x19   : > { %956 = vmatpush3.msra.mxu1 %v464_v12  ;;  %986 = vmatpush3.msra.mxu0 %v580_v24  ;;  %v691_v54 = vld [vmem:[%s1320_s7 + $0x60] sm:$0xff]  ;;  %v690_v55 = vld [vmem:[%s1320_s7 + $0x58] sm:$0xff]  ;;  %v689_v56 = vld [vmem:[%s1320_s7 + $0x50] sm:$0xff] }
  0x1a   : > { %957 = vmatprep.subr.mxu1 %v463_v13  ;;  %987 = vmatprep.subr.mxu0 %v579_v25  ;;  %v688_v57 = vld [vmem:[%s1320_s7 + $0x48] sm:$0xff]  ;;  %v687_v58 = vld [vmem:[%s1320_s7 + $0x40] sm:$0xff]  ;;  %v686_v59 = vld [vmem:[%s1320_s7 + $0x38] sm:$0xff] }
  0x1b   : > { %958 = vmatpush3.msra.mxu1 %v463_v13  ;;  %988 = vmatpush3.msra.mxu0 %v579_v25  ;;  %v685_v60 = vld [vmem:[%s1320_s7 + $0x30] sm:$0xff]  ;;  %v684_v61 = vld [vmem:[%s1320_s7 + $0x28] sm:$0xff]  ;;  %v683_v62 = vld [vmem:[%s1320_s7 + $0x20] sm:$0xff] }
  0x1c   : > { %959 = vmatprep.subr.mxu1 %v462_v14  ;;  %989 = vmatprep.subr.mxu0 %v578_v26  ;;  %v862_v63 = vld [vmem:[%s1317_s4] ss:$0 sm:$0xff]  ;;  %v682_v12 = vld [vmem:[%s1320_s7 + $0x18] sm:$0xff]  ;;  %v681_v13 = vld [vmem:[%s1320_s7 + $0x10] sm:$0xff] }
  0x1d   : > { %960 = vmatpush3.msra.mxu1 %v462_v14  ;;  %990 = vmatpush3.msra.mxu0 %v578_v26  ;;  %v680_v14 = vld [vmem:[%s1320_s7 + $0x8] sm:$0xff] }
  0x1e   : > { %961 = vmatprep.subr.mxu1 %v461_v15  ;;  %991 = vmatprep.subr.mxu0 %v577_v27 }
  0x1f   : > { %962 = vmatpush3.msra.mxu1 %v461_v15  ;;  %992 = vmatpush3.msra.mxu0 %v577_v27  ;;  %v679_v15 = vld [vmem:[%s1320_s7] sm:$0xff] }
  0x20   : > { %963 = vmatprep.subr.mxu1 %v460_v16  ;;  %993 = vmatprep.subr.mxu0 %v576_v28 }
  0x21   : > { %964 = vmatpush3.msra.mxu1 %v460_v16  ;;  %994 = vmatpush3.msra.mxu0 %v576_v28  ;;  %v863_v16 = vld [vmem:[%s1319_s6] ss:$0 sm:$0xff] }
  0x22   : > { %965 = vmatprep.subr.mxu1 %v459_v17  ;;  %995 = vmatprep.subr.mxu0 %v575_v29 }
  0x23   : > { %966 = vmatpush3.msra.mxu1 %v459_v17  ;;  %996 = vmatpush3.msra.mxu0 %v575_v29 }
  0x24   : > { %967 = vmatprep.subr.mxu1 %v458_v18  ;;  %997 = vmatprep.subr.mxu0 %v574_v30 }
  0x25   : > { %968 = vmatpush3.msra.mxu1 %v458_v18  ;;  %998 = vmatpush3.msra.mxu0 %v574_v30  ;;  %v864_v30 = vld [vmem:[%s1321_s8] ss:$0 sm:$0xff] }
  0x26   : > { %969 = vmatprep.subr.mxu1 %v457_v19  ;;  %999 = vmatprep.subr.mxu0 %v573_v31 }
  0x27   : > { %970 = vmatpush3.msra.mxu1 %v457_v19  ;;  %1000 = vmatpush3.msra.mxu0 %v573_v31 }
  0x28   : > { %971 = vmatprep.subr.mxu1 %v456_v20  ;;  %1001 = vmatprep.subr.mxu0 %v572_v32 }
  0x29   : > { %972 = vmatpush3.msra.mxu1 %v456_v20  ;;  %1002 = vmatpush3.msra.mxu0 %v572_v32 }
  0x2a   : > { %973 = vmatprep.subr.mxu1 %v455_v21  ;;  %1003 = vmatprep.subr.mxu0 %v571_v33 }
  0x2b   : > { %974 = vmatpush3.msra.mxu1 %v455_v21  ;;  %1004 = vmatpush3.msra.mxu0 %v571_v33 }
  0x2c   : > { %1005 = vmatprep.subr.mxu0 %v570_v47  ;;  %1019 = vmatprep.subr.mxu1 %v694_v51 }
  0x2d   : > { %1006 = vmatpush3.msra.mxu0 %v570_v47 }
  0x2e   : > { %1007 = vmatprep.subr.mxu0 %v569_v48 }
  0x2f   : > { %1008 = vmatpush3.msra.mxu0 %v569_v48 }
  0x30   : > { %1009 = vmatprep.subr.mxu0 %v568_v49 }
  0x31   : > { %1010 = vmatpush3.msra.mxu0 %v568_v49 }
  0x32   : > { %1011 = vmatprep.subr.mxu0 %v567_v50 }
  0x33   : > { %1012 = vmatpush3.msra.mxu0 %v567_v50 }
  0xd1   : > { %v939_v35 = vpop.f32.mrf.mxu0 }
  0xd2   : > { %v438_v36 = vadd.f32 %v939_v35, %v856_v34 }
  0xd3   : > { %v432_v37 = vpop.f32.mrf.mxu0 }
  0xd4   : > { %v433_v38 = vadd.f32 %v856_v34, %v432_v37  ;;  %v452_v41 = vmax.f32 %v438_v36, 0.0 }
  0xd5   : > { %v942_v39 = vpop.f32.mrf.mxu0 }
  0xd6   : > { %v451_v40 = vmax.f32 %v433_v38, 0.0  ;;  %v448_v42 = vadd.f32 %v942_v39, %v856_v34 }
  0xd7   : > { %v442_v43 = vpop.f32.mrf.mxu0 }
  0xd8   : > { %v443_v44 = vadd.f32 %v856_v34, %v442_v43  ;;  %975 = vmatprep.mubr.f32.mxu1 %v451_v40  ;;  %v454_v46 = vmax.f32 %v448_v42, 0.0 }
  0xd9   : > { %976 = vmatmul.mubr.f32.vlgmr.msra.gmra.mxu1 %v452_v41 }
  0xda   : > { %v453_v45 = vmax.f32 %v443_v44, 0.0  ;;  %1020 = vmatpush3.msra.mxu1 %v694_v51 }
  0xdb   : > { %1021 = vmatprep.subr.mxu1 %v693_v52 }
  0xdc   : > { %978 = vmatprep.mubr.f32.mxu1 %v453_v45  ;;  %1022 = vmatpush3.msra.mxu1 %v693_v52 }
  0xdd   : > { %979 = vmatmul.mubr.f32.gmra.mxu1 %v454_v46  ;;  %1023 = vmatprep.subr.mxu1 %v692_v53 }
  0xde   : > { %1024 = vmatpush3.msra.mxu1 %v692_v53 }
  0xdf   : > { %1025 = vmatprep.subr.mxu1 %v691_v54 }
  0xe0   : > { %1026 = vmatpush3.msra.mxu1 %v691_v54 }
  0xe1   : > { %1027 = vmatprep.subr.mxu1 %v690_v55 }
  0xe2   : > { %1028 = vmatpush3.msra.mxu1 %v690_v55 }
  0xe3   : > { %1029 = vmatprep.subr.mxu1 %v689_v56 }
  0xe4   : > { %1030 = vmatpush3.msra.mxu1 %v689_v56 }
  0xe5   : > { %1031 = vmatprep.subr.mxu1 %v688_v57 }
  0xe6   : > { %1032 = vmatpush3.msra.mxu1 %v688_v57 }
  0xe7   : > { %1033 = vmatprep.subr.mxu1 %v687_v58 }
  0xe8   : > { %1034 = vmatpush3.msra.mxu1 %v687_v58 }
  0xe9   : > { %1035 = vmatprep.subr.mxu1 %v686_v59 }
  0xea   : > { %1036 = vmatpush3.msra.mxu1 %v686_v59 }
  0xeb   : > { %1037 = vmatprep.subr.mxu1 %v685_v60 }
  0xec   : > { %1038 = vmatpush3.msra.mxu1 %v685_v60 }
  0xed   : > { %1039 = vmatprep.subr.mxu1 %v684_v61 }
  0xee   : > { %1040 = vmatpush3.msra.mxu1 %v684_v61 }
  0xef   : > { %1041 = vmatprep.subr.mxu1 %v683_v62 }
  0xf0   : > { %1042 = vmatpush3.msra.mxu1 %v683_v62 }
  0xf1   : > { %1043 = vmatprep.subr.mxu1 %v682_v12 }
  0xf2   : > { %1044 = vmatpush3.msra.mxu1 %v682_v12 }
  0xf3   : > { %1045 = vmatprep.subr.mxu1 %v681_v13 }
  0xf4   : > { %1046 = vmatpush3.msra.mxu1 %v681_v13 }
  0xf5   : > { %1047 = vmatprep.subr.mxu1 %v680_v14 }
  0xf6   : > { %1048 = vmatpush3.msra.mxu1 %v680_v14 }
  0xf7   : > { %1049 = vmatprep.subr.mxu1 %v679_v15 }
  0xf8   : > { %1050 = vmatpush3.msra.mxu1 %v679_v15 }
 0x199   : > { %v977_v0 = vpop.f32.mrf.mxu1 }
 0x19a   : > { %v550_v1 = vadd.f32 %v977_v0, %v862_v63 }
 0x19b   : > { %v544_v2 = vpop.f32.mrf.mxu1 }
 0x19c   : > { %v545_v3 = vadd.f32 %v862_v63, %v544_v2  ;;  %v564_v6 = vmax.f32 %v550_v1, 0.0 }
 0x19d   : > { %v980_v4 = vpop.f32.mrf.mxu1 }
 0x19e   : > { %v563_v5 = vmax.f32 %v545_v3, 0.0  ;;  %v560_v7 = vadd.f32 %v980_v4, %v862_v63 }
 0x19f   : > { %v554_v8 = vpop.f32.mrf.mxu1 }
 0x1a0   : > { %v555_v9 = vadd.f32 %v862_v63, %v554_v8  ;;  %1013 = vmatprep.mubr.f32.mxu0 %v563_v5  ;;  %v566_v11 = vmax.f32 %v560_v7, 0.0 }
 0x1a1   : > { %1014 = vmatmul.mubr.f32.vlgmr.msra.gmra.mxu0 %v564_v6 }
 0x1a2   : > { %v565_v10 = vmax.f32 %v555_v9, 0.0 }
 0x1a4   : > { %1016 = vmatprep.mubr.f32.mxu0 %v565_v10 }
 0x1a5   : > { %1017 = vmatmul.mubr.f32.gmra.mxu0 %v566_v11 }
 0x261   : > { %v1015_v17 = vpop.f32.mrf.mxu0 }
 0x262   : > { %v662_v18 = vadd.f32 %v1015_v17, %v863_v16 }
 0x263   : > { %v656_v19 = vpop.f32.mrf.mxu0 }
 0x264   : > { %v657_v20 = vadd.f32 %v863_v16, %v656_v19  ;;  %v676_v23 = vmax.f32 %v662_v18, 0.0 }
 0x265   : > { %v1018_v21 = vpop.f32.mrf.mxu0 }
 0x266   : > { %v675_v22 = vmax.f32 %v657_v20, 0.0  ;;  %v672_v24 = vadd.f32 %v1018_v21, %v863_v16 }
 0x267   : > { %v666_v25 = vpop.f32.mrf.mxu0 }
 0x268   : > { %v667_v26 = vadd.f32 %v863_v16, %v666_v25  ;;  %1051 = vmatprep.mubr.f32.mxu1 %v675_v22  ;;  %v678_v28 = vmax.f32 %v672_v24, 0.0 }
 0x269   : > { %1052 = vmatmul.mubr.f32.vlgmr.msra.gmra.mxu1 %v676_v23 }
 0x26a   : > { %v677_v27 = vmax.f32 %v667_v26, 0.0 }
 0x26c   : > { %1054 = vmatprep.mubr.f32.mxu1 %v677_v27 }
 0x26d   : > { %1055 = vmatmul.mubr.f32.gmra.mxu1 %v678_v28 }
 0x329   : > { %v1053_v29 = vpop.f32.mrf.mxu1 }
 0x32a   : > { %v774_v33 = vadd.f32 %v1053_v29, %v864_v30 }
 0x32b   : > { %v768_v31 = vpop.f32.mrf.mxu1 }
 0x32c   : > { %v769_v32 = vadd.f32 %v864_v30, %v768_v31  ;;  %788 = vst [vmem:[%s334_s17 + $0x8] sm:$0xff] %v774_v33 }
 0x32d   : > { %v1056_v34 = vpop.f32.mrf.mxu1 }
 0x32e   : > { %787 = vst [vmem:[%s334_s17] sm:$0xff] %v769_v32  ;;  %v784_v37 = vadd.f32 %v1056_v34, %v864_v30 }
 0x32f   : > { %v778_v35 = vpop.f32.mrf.mxu1 }
 0x330   : > { %v779_v36 = vadd.f32 %v864_v30, %v778_v35  ;;  %790 = vst [vmem:[%s334_s17 + $0x18] sm:$0xff] %v784_v37 }
 0x332   : > { %789 = vst [vmem:[%s334_s17 + $0x10] sm:$0xff] %v779_v36 }
 0x333 PF: > { %s19_s30 = sadd.s32 1, %s1071_s30  }
 0x334   : > { %p16_p4 = scmp.ge.s32.totalorder %s19_s30, 4  }
 0x336   :  { %18 = sbr.rel (!%p16_p4) target bundleno = 1 (0x1), region = 86 }

</bundles_post_ra>
